<compile_context>
chip_gen: v7x
topology: tpu7x:2x2x1
jax: 0.10.0
libtpu: 0.0.40
codegen_flags: <defaults>
</compile_context>

<pallas_src>
import functools
import math

import jax
import jax.numpy as jnp
from jax.experimental import pallas as pl
from jax.experimental.pallas import tpu as pltpu


def _round_up(n, m):
    return ((n + m - 1) // m) * m


# ----------------------------- kernels ------------------------------------ #

def _support_kernel(x_ref, w_ref, o_ref):
    # support tile = x_tile @ W   (bf16 in, f32 accumulate, bf16 out)
    o_ref[...] = jnp.dot(
        x_ref[...], w_ref[...], preferred_element_type=jnp.float32
    ).astype(o_ref.dtype)


def _aggregate_kernel(adj_ref, sup_ref, b_ref, o_ref, *, tk, sup_resident):
    # out_tile = relu( sum_k adj[i, k] @ support[k] + bias )
    # The output block's index_map ignores k, so o_ref stays VMEM-resident
    # across the reduction and doubles as the f32 accumulator (no scratch).
    k = pl.program_id(1)

    @pl.when(k == 0)
    def _():
        o_ref[...] = jnp.zeros_like(o_ref)

    adj_blk = adj_ref[...].astype(jnp.bfloat16)   # cast-on-load (adj may be f32)
    if sup_resident:
        start = pl.multiple_of(k * tk, tk)
        sup_blk = sup_ref[pl.ds(start, tk), :]    # whole support resident in VMEM
    else:
        sup_blk = sup_ref[...]

    o_ref[...] += jnp.dot(adj_blk, sup_blk, preferred_element_type=jnp.float32)

    @pl.when(k == pl.num_programs(1) - 1)
    def _():
        out = jnp.maximum(o_ref[...] + b_ref[...], 0.0)
        # TODO(synk): F.dropout(training=True) is stochastic; kernel implements
        # inference-mode (identity) dropout.
        o_ref[...] = out


# ----------------------------- wrapper ------------------------------------ #

def gcn_en_forward(x, adj, weight, bias, *, tm_target=512, tk_target=512):
    N, nfeat = x.shape
    nhid = weight.shape[1]

    # Lane-dense hidden dim (multiple of 128). Do NOT pad further: adj@support
    # is HBM-bound on every generation, extra columns are pure waste.
    H = max(128, _round_up(nhid, 128))

    n128 = max(128, _round_up(N, 128))
    # Reduction tile: as large as possible (fewer grid steps) up to target.
    tk = min(tk_target, n128)
    # Row tile: large, but keep >= 2 row tiles when N allows it so the
    # "parallel" row axis can feed both TensorCores on v7x.
    tm = min(tm_target, n128)
    if N >= 256:
        while tm > 128 and _round_up(N, tm) // tm < 2:
            tm -= 128
    tm = max(tm, 128)

    Np_r = _round_up(N, tm)   # adj rows / output rows
    Np_c = _round_up(N, tk)   # adj cols / support rows

    # ---- adjacency: avoid a full padded bf16 copy when N is tile-aligned. ----
    adj = jnp.asarray(adj)
    if (Np_r, Np_c) != (N, N):
        # Ragged tail: one pad+cast pass (kernel then streams bf16 tiles).
        adj_in = jnp.zeros((Np_r, Np_c), jnp.bfloat16).at[:N, :N].set(
            adj.astype(jnp.bfloat16))
    else:
        # Aligned: feed adj as-is (typically f32), cast per-tile inside kernel.
        adj_in = adj

    # ---- small operands (x, W, bias): pad / cast, negligible traffic. ----
    x_b = x.astype(jnp.bfloat16)
    if Np_c != N:
        x_p = jnp.zeros((Np_c, nfeat), jnp.bfloat16).at[:N, :].set(x_b)
    else:
        x_p = x_b
    w_p = jnp.zeros((nfeat, H), jnp.bfloat16).at[:, :nhid].set(
        weight.astype(jnp.bfloat16))
    b_p = jnp.zeros((1, H), jnp.float32).at[0, :nhid].set(
        bias.astype(jnp.float32))

    # ---- support = x @ W : tiny GEMM, large row tiles (divides Np_c). ----
    n_k = Np_c // tk
    cap = max(1, 2048 // tk)
    div = 1
    for d in range(1, n_k + 1):
        if n_k % d == 0 and d <= cap:
            div = d
    ts = div * tk

    support = pl.pallas_call(
        _support_kernel,
        out_shape=jax.ShapeDtypeStruct((Np_c, H), jnp.bfloat16),
        grid=(Np_c // ts,),
        in_specs=[
            pl.BlockSpec((ts, nfeat), lambda i: (i, 0)),
            pl.BlockSpec((nfeat, H), lambda i: (0, 0)),
        ],
        out_specs=pl.BlockSpec((ts, H), lambda i: (i, 0)),
        compiler_params=pltpu.CompilerParams(
            dimension_semantics=("parallel",),
        ),
        cost_estimate=pl.CostEstimate(
            flops=2 * Np_c * nfeat * H,
            transcendentals=0,
            bytes_accessed=Np_c * nfeat * 2 + nfeat * H * 2 + Np_c * H * 2,
        ),
    )(x_p, w_p)

    # ---- out = relu(adj @ support + bias), tiled (rows x K). ----
    # Keep support fully VMEM-resident (DMA'd once) when it fits with headroom
    # for v7x's 64 MiB VMEM; otherwise fall back to per-K tiles (the large tm
    # already amortizes the re-fetch to <= 0.25x of adj traffic).
    sup_resident = (2 * Np_c * H * 2) <= 16 * 1024 * 1024
    if sup_resident:
        sup_spec = pl.BlockSpec((Np_c, H), lambda i, k: (0, 0))
        sup_vmem = 2 * Np_c * H * 2
    else:
        sup_spec = pl.BlockSpec((tk, H), lambda i, k: (k, 0))
        sup_vmem = 2 * tk * H * 2

    adj_isz = jnp.dtype(adj_in.dtype).itemsize
    vmem_bytes = (2 * tm * tk * adj_isz   # adj tiles (double-buffered)
                  + sup_vmem              # support
                  + 2 * H * 4             # bias
                  + 2 * tm * H * 4)       # f32 output/accumulator tiles
    vmem_limit = min(max(int(vmem_bytes * 1.25) + 4 * 2**20, 16 * 2**20),
                     60 * 2**20)          # stay under v7x's 64 MiB physical

    out_p = pl.pallas_call(
        functools.partial(_aggregate_kernel, tk=tk, sup_resident=sup_resident),
        out_shape=jax.ShapeDtypeStruct((Np_r, H), jnp.float32),
        grid=(Np_r // tm, Np_c // tk),
        in_specs=[
            pl.BlockSpec((tm, tk), lambda i, k: (i, k)),   # adj tile
            sup_spec,                                      # support
            pl.BlockSpec((1, H), lambda i, k: (0, 0)),     # bias
        ],
        out_specs=pl.BlockSpec((tm, H), lambda i, k: (i, 0)),
        compiler_params=pltpu.CompilerParams(
            dimension_semantics=("parallel", "arbitrary"),
            vmem_limit_bytes=vmem_limit,
        ),
        cost_estimate=pl.CostEstimate(
            flops=2 * Np_r * Np_c * H,
            transcendentals=0,
            bytes_accessed=(Np_r * Np_c * adj_isz + Np_c * H * 2
                            + H * 4 + Np_r * H * 4),
        ),
    )(adj_in, support, b_p)

    return out_p[:N, :nhid]


# ----------------------------- reference ---------------------------------- #

def _reference_matched(x, adj, weight, bias):
    """Reference following the same bf16-input / f32-accumulate pipeline."""
    xb = x.astype(jnp.bfloat16)
    wb = weight.astype(jnp.bfloat16)
    ab = adj.astype(jnp.bfloat16)
    support = jnp.dot(xb, wb, preferred_element_type=jnp.float32)
    support = support.astype(jnp.bfloat16)
    out = jnp.dot(ab, support, preferred_element_type=jnp.float32)
    out = out + bias[None, :].astype(jnp.float32)
    return jnp.maximum(out, 0.0)


def _reference_f32(x, adj, weight, bias):
    support = x @ weight
    out = adj @ support + bias[None, :]
    return jnp.maximum(out, 0.0)


# ------------------------------- main -------------------------------------- #

if __name__ == "__main__":
    # Small shapes consistent with the module: N nodes, nfeat in, nhid hidden.
    N, nfeat, nhid = 256, 64, 32

    key = jax.random.PRNGKey(0)
    kx, kadj, kw, kb = jax.random.split(key, 4)

    x = jax.random.normal(kx, (N, nfeat), dtype=jnp.float32)
    # Symmetric, row-normalized dense adjacency (dense stand-in for spmm).
    a = jax.random.uniform(kadj, (N, N), dtype=jnp.float32)
    adj = (a + a.T) * 0.5
    adj = adj / jnp.sum(adj, axis=1, keepdims=True)

    # Parameter init matching GraphConvolution.reset_parameters.
    stdv = 1.0 / math.sqrt(nhid)
    weight = jax.random.uniform(
        kw, (nfeat, nhid), minval=-stdv, maxval=stdv, dtype=jnp.float32)
    bias = jax.random.uniform(
        kb, (nhid,), minval=-stdv, maxval=stdv, dtype=jnp.float32)

    out = gcn_en_forward(x, adj, weight, bias)
    out = jax.block_until_ready(out)
    assert out.shape == (N, nhid)

    # Strict check against a precision-matched (bf16 in / f32 acc) reference.
    ref = _reference_matched(x, adj, weight, bias)
    assert jnp.allclose(out, ref, atol=1e-3, rtol=1e-3), "mismatch vs matched ref"

    # Loose sanity check against the pure-f32 reference (bf16 rounding error).
    ref32 = _reference_f32(x, adj, weight, bias)
    assert jnp.allclose(out, ref32, atol=5e-2, rtol=5e-2), "mismatch vs f32 ref"

    print("KERNEL_OK")
</pallas_src>

<mosaic_0001>
module attributes {stable_mosaic.version = 11 : i64} {
  func.func @_support_kernel(%arg0: i32, %arg1: memref<256x64xbf16, #tpu.memory_space<vmem>>, %arg2: memref<64x128xbf16, #tpu.memory_space<vmem>>, %arg3: memref<256x128xbf16, #tpu.memory_space<vmem>>) attributes {dimension_semantics = [#tpu.dimension_semantics<parallel>], iteration_bounds = array<i64: 1>, scalar_prefetch = 0 : i64, scratch_operands = 0 : i64, tpu.core_type = #tpu.core_type<tc>, window_params = [{transform_indices = @transform_0, window_bounds = array<i64: 256, 64>}, {pipeline_mode = #tpu.pipeline_mode<synchronous>, transform_indices = @transform_1, window_bounds = array<i64: 64, 128>}, {transform_indices = @transform_2, window_bounds = array<i64: 256, 128>}]} {
    %c0 = arith.constant 0 : index
    %c0_0 = arith.constant 0 : index
    %0 = vector.load %arg1[%c0, %c0_0] : memref<256x64xbf16, #tpu.memory_space<vmem>>, vector<256x64xbf16>
    %c0_1 = arith.constant 0 : index
    %c0_2 = arith.constant 0 : index
    %1 = vector.load %arg2[%c0_1, %c0_2] : memref<64x128xbf16, #tpu.memory_space<vmem>>, vector<64x128xbf16>
    %cst = arith.constant dense<0.000000e+00> : vector<256x128xf32>
    %2 = tpu.matmul %0, %1, %cst {dimension_numbers = #tpu.dot_dimension_numbers<[1], [0], [0], [1], [0, 0, 1, 1], [], []>} : vector<256x64xbf16>, vector<64x128xbf16>, vector<256x128xf32> -> vector<256x128xf32>
    %3 = arith.truncf %2 : vector<256x128xf32> to vector<256x128xbf16>
    %c0_3 = arith.constant 0 : index
    %c0_4 = arith.constant 0 : index
    %4 = vector.load %arg3[%c0_3, %c0_4] : memref<256x128xbf16, #tpu.memory_space<vmem>>, vector<256x128xbf16>
    tpu.vector_store %arg3[%c0_3, %c0_4], %3 {strides = array<i32>} : memref<256x128xbf16, #tpu.memory_space<vmem>>, vector<256x128xbf16>,
    return
  }
  func.func @transform_0(%arg0: i32) -> (i32, i32) {
    %c0_i32 = arith.constant 0 : i32
    %c0_i32_0 = arith.constant 0 : i32
    return %arg0, %c0_i32 : i32, i32
  }
  func.func @transform_1(%arg0: i32) -> (i32, i32) {
    %c0_i32 = arith.constant 0 : i32
    %c0_i32_0 = arith.constant 0 : i32
    %c0_i32_1 = arith.constant 0 : i32
    return %c0_i32, %c0_i32_0 : i32, i32
  }
  func.func @transform_2(%arg0: i32) -> (i32, i32) {
    %c0_i32 = arith.constant 0 : i32
    %c0_i32_0 = arith.constant 0 : i32
    return %arg0, %c0_i32 : i32, i32
  }
}

</mosaic_0001>

<bundles_post_ra>
// kernel: tpu_custom_call.1
= control target key start
LH: loop header
LB: loop body
LE: loop exit
PB: predicated region body
PF: predicated region fallthrough
CT: control target
= control target key end

     0   :  { %vm157_vm0 = vcmask 523264   ;;  %s959_s0 = inlined_call_operand.vmem [shape: bf16[256,64], index: 0, kind: input, shape index: {}]   ;;  %s960_s1 = inlined_call_operand.vmem [shape: bf16[64,128], index: 1, kind: input, shape index: {}]   ;;  %s961_s2 = inlined_call_operand.hbm [shape: bf16[256,128], index: 2, kind: output, shape index: {}]  }
   0x1   :  { %v809_v0 = vld [vmem:[%s960_s1] sm:$0xff]   ;;  %v810_v1 = vld [vmem:[%s960_s1 + $0x8] sm:$0xff]   ;;  %v811_v2 = vld [vmem:[%s960_s1 + $0x10] sm:$0xff]  }
   0x2   :  { %758 = vmatprep.subr.bf16.mxu0 %v809_v0  ;;  %798 = vmatprep.subr.bf16.mxu1 %v809_v0  ;;  %v813_v3 = vld [vmem:[%s959_s0] sm:$0xff]   ;;  %v812_v5 = vld [vmem:[%s960_s1 + $0x18] sm:$0xff]   ;;  %v815_v6 = vld [vmem:[%s959_s0 + $0x8] sm:$0xff]  }
   0x3   :  { %759 = vmatpush3.bf16.msra.mxu0 %v809_v0  ;;  %802 = vmatpush3.bf16.msra.mxu1 %v809_v0  ;;  %v814_v4 = vld [vmem:[%s959_s0 + $0x40] sm:$0xff]   ;;  %v816_v7 = vld [vmem:[%s959_s0 + $0x48] sm:$0xff]   ;;  %v817_v8 = vld [vmem:[%s959_s0 + $0x10] sm:$0xff]  }
   0x4   :  { %760 = vmatprep.subr.bf16.mxu0 %v810_v1  ;;  %799 = vmatprep.subr.bf16.mxu1 %v810_v1  ;;  %v818_v9 = vld [vmem:[%s959_s0 + $0x50] sm:$0xff]  }
   0x5   :  { %766 = vmatprep.mubr.msk.bf16.mxu0 %vm157_vm0, %v813_v3  ;;  %782 = vmatprep.mubr.msk.bf16.mxu1 %vm157_vm0, %v814_v4 }
   0x7   :  { %761 = vmatpush3.bf16.msra.mxu0 %v810_v1  ;;  %803 = vmatpush3.bf16.msra.mxu1 %v810_v1 }
   0x8   :  { %762 = vmatprep.subr.bf16.mxu0 %v811_v2  ;;  %800 = vmatprep.subr.bf16.mxu1 %v811_v2 }
   0xb   :  { %763 = vmatpush3.bf16.msra.mxu0 %v811_v2  ;;  %804 = vmatpush3.bf16.msra.mxu1 %v811_v2 }
   0xc   :  { %764 = vmatprep.subr.bf16.mxu0 %v812_v5  ;;  %801 = vmatprep.subr.bf16.mxu1 %v812_v5 }
   0xf   :  { %765 = vmatpush3.bf16.msra.mxu0 %v812_v5  ;;  %805 = vmatpush3.bf16.msra.mxu1 %v812_v5 }
  0x12   :  { %767 = vmatmul.mubr.msk.bf16.vlgmr.msra.gmra.mrb[0].mxu0 %vm157_vm0, %v815_v6  ;;  %783 = vmatmul.mubr.msk.bf16.vlgmr.msra.gmra.mrb[0].mxu1 %vm157_vm0, %v816_v7 }
  0x13   :  { %770 = vmatprep.mubr.msk.bf16.mxu0 %vm157_vm0, %v817_v8  ;;  %786 = vmatprep.mubr.msk.bf16.mxu1 %vm157_vm0, %v818_v9 }
  0x14   :  { %7 = vsyncpa [#allocation3], 0  ;;  %v819_v10 = vld [vmem:[%s959_s0 + $0x18] sm:$0xff]   ;;  %v821_v12 = vld [vmem:[%s959_s0 + $0x20] sm:$0xff]  }
  0x15   :  { %v820_v11 = vld [vmem:[%s959_s0 + $0x58] sm:$0xff]   ;;  %v822_v13 = vld [vmem:[%s959_s0 + $0x60] sm:$0xff]   ;;  %v823_v14 = vld [vmem:[%s959_s0 + $0x28] sm:$0xff]  }
  0x16   :  { %v824_v15 = vld [vmem:[%s959_s0 + $0x68] sm:$0xff]   ;;  %v825_v16 = vld [vmem:[%s959_s0 + $0x30] sm:$0xff]   ;;  %v827_v18 = vld [vmem:[%s959_s0 + $0x38] sm:$0xff]  }
  0x17   :  { %v826_v17 = vld [vmem:[%s959_s0 + $0x70] sm:$0xff]   ;;  %v828_v19 = vld [vmem:[%s959_s0 + $0x78] sm:$0xff]   ;;  %s853_s0 = smov [#allocation2]  }
  0x18   :  { %s532_s20 = sshll.u32 %s853_s0, 4  ;;  %s533_s20 = int_to_ptr.vmem [resolvable:$true] %s532_s20 }
  0x19   :  { %s829_s21 = scalar_lea.vmem %s533_s20, 2048  ;;  %p834_p1 = scmp.lt.s32.totalorder %s533_s20, %s533_s20 }
  0x1a   :  { %771 = vmatmul.mubr.msk.bf16.gmra.mrb[4].mxu0 %vm157_vm0, %v819_v10  ;;  %787 = vmatmul.mubr.msk.bf16.gmra.mrb[4].mxu1 %vm157_vm0, %v820_v11  ;;  %p830_p0 = scmp.ne.s32.totalorder %s533_s20, %s829_s21  ;;  %p835_p2 = scmp.lt.s32.totalorder %s829_s21, %s829_s21 }
  0x1b   :  { %774 = vmatprep.mubr.msk.bf16.mxu0 %vm157_vm0, %v821_v12  ;;  %790 = vmatprep.mubr.msk.bf16.mxu1 %vm157_vm0, %v822_v13 }
  0x1c   :  { %p836_p3 = por %p835_p2, %p834_p1 }
  0x1e   :  { %p837_p4 = pnand %p836_p3, %p830_p0 }
  0x22   :  { %775 = vmatmul.mubr.msk.bf16.gmra.mrb[8].mxu0 %vm157_vm0, %v823_v14  ;;  %791 = vmatmul.mubr.msk.bf16.gmra.mrb[8].mxu1 %vm157_vm0, %v824_v15 }
  0x23   :  { %778 = vmatprep.mubr.msk.bf16.mxu0 %vm157_vm0, %v825_v16  ;;  %794 = vmatprep.mubr.msk.bf16.mxu1 %vm157_vm0, %v826_v17 }
  0x2a   :  { %779 = vmatmul.mubr.msk.bf16.gmra.mrb[12].mxu0 %vm157_vm0, %v827_v18  ;;  %795 = vmatmul.mubr.msk.bf16.gmra.mrb[12].mxu1 %vm157_vm0, %v828_v19 }
  0xe5   :  { %v768_v20 = vpop.f32.mrb[0].mxu0  ;;  %v784_v21 = vpop.f32.mrb[0].mxu1 }
  0xe6   :  { %v240_v22 = vpop.f32.mrb[1].mxu0  ;;  %v304_v23 = vpop.f32.mrb[1].mxu1 }
  0xe7   :  { %v769_v24 = vpop.f32.mrb[2].mxu0  ;;  %v785_v25 = vpop.f32.mrb[2].mxu1 }
  0xe8   :  { %v651_v26 = vpack.c.bf16 %v769_v24, %v768_v20  ;;  %v691_v27 = vpack.c.bf16 %v785_v25, %v784_v21  ;;  %v243_v28 = vpop.f32.mrb[3].mxu0  ;;  %v307_v29 = vpop.f32.mrb[3].mxu1 }
  0xe9   :  { %v646_v30 = vpack.c.bf16 %v243_v28, %v240_v22  ;;  %v686_v31 = vpack.c.bf16 %v307_v29, %v304_v23 }
  0xea   :  { %723 = vst [vmem:[#allocation2 + $0x8] sm:$0xff] %v651_v26   ;;  %731 = vst [vmem:[#allocation2 + $0x48] sm:$0xff] %v691_v27  }
  0xeb   :  { %647 = vst [vmem:[#allocation2] sm:$0xff] %v646_v30   ;;  %730 = vst [vmem:[#allocation2 + $0x40] sm:$0xff] %v686_v31  }
  0xed   :  { %v772_v32 = vpop.f32.mrb[4].mxu0  ;;  %v788_v33 = vpop.f32.mrb[4].mxu1 }
  0xee   :  { %v256_v34 = vpop.f32.mrb[5].mxu0  ;;  %v320_v35 = vpop.f32.mrb[5].mxu1 }
  0xef   :  { %v773_v36 = vpop.f32.mrb[6].mxu0  ;;  %v789_v37 = vpop.f32.mrb[6].mxu1 }
  0xf0   :  { %v661_v38 = vpack.c.bf16 %v773_v36, %v772_v32  ;;  %v701_v39 = vpack.c.bf16 %v789_v37, %v788_v33  ;;  %v259_v40 = vpop.f32.mrb[7].mxu0  ;;  %v323_v41 = vpop.f32.mrb[7].mxu1 }
  0xf1   :  { %v656_v42 = vpack.c.bf16 %v259_v40, %v256_v34  ;;  %v696_v43 = vpack.c.bf16 %v323_v41, %v320_v35 }
  0xf2   :  { %725 = vst [vmem:[#allocation2 + $0x18] sm:$0xff] %v661_v38   ;;  %733 = vst [vmem:[#allocation2 + $0x58] sm:$0xff] %v701_v39  }
  0xf3   :  { %724 = vst [vmem:[#allocation2 + $0x10] sm:$0xff] %v656_v42   ;;  %732 = vst [vmem:[#allocation2 + $0x50] sm:$0xff] %v696_v43  }
  0xf5   :  { %v776_v44 = vpop.f32.mrb[8].mxu0  ;;  %v792_v45 = vpop.f32.mrb[8].mxu1 }
  0xf6   :  { %v272_v46 = vpop.f32.mrb[9].mxu0  ;;  %v336_v47 = vpop.f32.mrb[9].mxu1 }
  0xf7   :  { %v777_v48 = vpop.f32.mrb[10].mxu0  ;;  %v793_v49 = vpop.f32.mrb[10].mxu1 }
  0xf8   :  { %v671_v50 = vpack.c.bf16 %v777_v48, %v776_v44  ;;  %v711_v51 = vpack.c.bf16 %v793_v49, %v792_v45  ;;  %v275_v52 = vpop.f32.mrb[11].mxu0  ;;  %v339_v53 = vpop.f32.mrb[11].mxu1 }
  0xf9   :  { %v666_v54 = vpack.c.bf16 %v275_v52, %v272_v46  ;;  %v706_v55 = vpack.c.bf16 %v339_v53, %v336_v47 }
  0xfa   :  { %727 = vst [vmem:[#allocation2 + $0x28] sm:$0xff] %v671_v50   ;;  %735 = vst [vmem:[#allocation2 + $0x68] sm:$0xff] %v711_v51  }
  0xfb   :  { %726 = vst [vmem:[#allocation2 + $0x20] sm:$0xff] %v666_v54   ;;  %734 = vst [vmem:[#allocation2 + $0x60] sm:$0xff] %v706_v55  }
  0xfd   :  { %v780_v56 = vpop.f32.mrb[12].mxu0  ;;  %v796_v57 = vpop.f32.mrb[12].mxu1 }
  0xfe   :  { %v288_v58 = vpop.f32.mrb[13].mxu0  ;;  %v352_v59 = vpop.f32.mrb[13].mxu1 }
  0xff   :  { %v781_v60 = vpop.f32.mrb[14].mxu0  ;;  %v797_v61 = vpop.f32.mrb[14].mxu1 }
 0x100   :  { %v681_v62 = vpack.c.bf16 %v781_v60, %v780_v56  ;;  %v721_v63 = vpack.c.bf16 %v797_v61, %v796_v57  ;;  %v291_v0 = vpop.f32.mrb[15].mxu0  ;;  %v355_v1 = vpop.f32.mrb[15].mxu1 }
 0x101   :  { %v676_v2 = vpack.c.bf16 %v291_v0, %v288_v58  ;;  %v716_v3 = vpack.c.bf16 %v355_v1, %v352_v59 }
 0x102   :  { %729 = vst [vmem:[#allocation2 + $0x38] sm:$0xff] %v681_v62   ;;  %737 = vst [vmem:[#allocation2 + $0x78] sm:$0xff] %v721_v63  }
 0x103   :  { %728 = vst [vmem:[#allocation2 + $0x30] sm:$0xff] %v676_v2   ;;  %736 = vst [vmem:[#allocation2 + $0x70] sm:$0xff] %v716_v3  }
 0x104   :  { %840 = shalt.err (!%p837_p4)
}
 0x105   :  { %s841_s24 = scalar_lea.hbm %s961_s2, 2048 }
 0x106   :  { %p842_p5 = scmp.ne.s32.totalorder %s961_s2, %s841_s24  ;;  %p845_p6 = scmp.lt.u32.totalorder %s841_s24, %s961_s2 }
 0x108   :  { %p847_p7 = pnand %p845_p6, %p842_p5 }
 0x10a   :  { %850 = shalt.err (!%p847_p7)
}
 0x10b   :  { %s854_s28 = smov 64   ;;  %s855_s29 = smov 4  }
 0x10c   :  { %538 = dma.vmem_to_hbm [thread:$0]  %s533_s20, 2048, %s961_s2, [#allocation3], %s854_s28, %s854_s28, %s855_s29  }
 0x10d   :  { %851 = dma.done.wait [#allocation3], 2048  }
 0x10e   :  { %852 = vsyncadd [#allocation3], 4294965248 }
 0x10f   :  { %542 = vsyncpa [#allocation3], 1 }

</bundles_post_ra>
